<compile_context>
chip_gen: v5e
topology: v5e:2x2
jax: 0.10.0
libtpu: 0.0.40
codegen_flags: <defaults>
</compile_context>

<pallas_src>
import functools

import jax
import jax.numpy as jnp
from jax.experimental import pallas as pl
from jax.experimental.pallas import tpu as pltpu

LANES = 128
SUBLANES = 8
TARGET_BLOCK_BYTES = 2 * 1024 * 1024  # ~2 MiB of DMA per input block per step


def _round_up(x, m):
    return ((x + m - 1) // m) * m


def _lossd_kernel(rx_ref, rxh_ref, o_ref, acc_ref, *,
                  tile_rows, blocks_per_part, rows):
    p = pl.program_id(0)   # partition axis ("parallel")
    j = pl.program_id(1)   # reduction axis ("arbitrary", last)

    @pl.when(j == 0)
    def _init():
        acc_ref[p] = jnp.zeros((SUBLANES, LANES), jnp.float32)

    # Load in native dtype; f32 convert + hinge are pure VPU, hidden under DMA.
    rx = rx_ref[...].astype(jnp.float32)
    rxh = rxh_ref[...].astype(jnp.float32)
    hinge = jnp.maximum(1.0 + rxh, 0.0) + jnp.maximum(1.0 - rx, 0.0)

    # Global block / row coordinates of this step (row indices stay << 2^31).
    gb = p * blocks_per_part + j
    row0 = gb * tile_rows
    is_full = row0 + tile_rows <= rows   # every row of this block is in-bounds

    @pl.when(is_full)
    def _acc_full():
        acc_ref[p] += jnp.sum(
            hinge.reshape(tile_rows // SUBLANES, SUBLANES, LANES), axis=0)

    @pl.when(jnp.logical_not(is_full))
    def _acc_masked():
        # Only blocks overhanging the array pay for the mask.
        row_idx = jax.lax.broadcasted_iota(jnp.int32, (tile_rows, LANES), 0)
        masked = jnp.where(row0 + row_idx < rows, hinge, 0.0)
        acc_ref[p] += jnp.sum(
            masked.reshape(tile_rows // SUBLANES, SUBLANES, LANES), axis=0)

    @pl.when(j == pl.num_programs(1) - 1)
    def _finalize():
        o_ref[0] = acc_ref[p]


def loss_d(r_x, r_x_hat):
    """Pallas implementation of LossD.forward. Returns shape (1,) float32."""
    assert r_x.shape == r_x_hat.shape
    n = r_x.size
    if n == 0:
        # torch's mean of an empty tensor is NaN.
        return jnp.full((1,), jnp.nan, jnp.float32)

    rx = jnp.ravel(r_x)
    rxh = jnp.ravel(r_x_hat)

    # 128-aligned prefix goes to the kernel; the (<128-element) ragged tail,
    # if any, is reduced with a tiny XLA expression (no padded full copies).
    n_main = (n // LANES) * LANES
    tail = n - n_main

    tail_sum = jnp.zeros((), jnp.float32)
    if tail:
        rx_t = rx[n_main:].astype(jnp.float32)
        rxh_t = rxh[n_main:].astype(jnp.float32)
        tail_sum = jnp.sum(jnp.maximum(1.0 + rxh_t, 0.0)
                           + jnp.maximum(1.0 - rx_t, 0.0))

    if n_main == 0:
        return (tail_sum * (1.0 / n)).reshape(1)

    rows = n_main // LANES
    rx2 = (rx if n_main == n else rx[:n_main]).reshape(rows, LANES)
    rxh2 = (rxh if n_main == n else rxh[:n_main]).reshape(rows, LANES)

    # Dtype-aware tile: keep ~TARGET_BLOCK_BYTES of DMA per input per step.
    bytes_per_row = LANES * jnp.dtype(rx2.dtype).itemsize
    target_rows = max(
        SUBLANES, (TARGET_BLOCK_BYTES // bytes_per_row) // SUBLANES * SUBLANES)
    tile_rows = min(target_rows, _round_up(rows, SUBLANES))
    total_blocks = pl.cdiv(rows, tile_rows)

    # 2 partitions whenever there is enough work: maps to both TensorCores on
    # v7x via the "parallel" leading axis.  Over-covered blocks are clamped in
    # the index_map and fully masked in the kernel.
    num_parts = 2 if total_blocks >= 2 else 1
    blocks_per_part = pl.cdiv(total_blocks, num_parts)

    kernel = functools.partial(
        _lossd_kernel,
        tile_rows=tile_rows,
        blocks_per_part=blocks_per_part,
        rows=rows,
    )

    def in_index_map(p, j):
        gb = p * blocks_per_part + j
        return (jnp.minimum(gb, total_blocks - 1), 0)

    partials = pl.pallas_call(
        kernel,
        out_shape=jax.ShapeDtypeStruct((num_parts, SUBLANES, LANES),
                                       jnp.float32),
        grid_spec=pltpu.PrefetchScalarGridSpec(
            num_scalar_prefetch=0,
            grid=(num_parts, blocks_per_part),
            in_specs=[
                pl.BlockSpec((tile_rows, LANES), in_index_map),
                pl.BlockSpec((tile_rows, LANES), in_index_map),
            ],
            out_specs=pl.BlockSpec((1, SUBLANES, LANES),
                                   lambda p, j: (p, 0, 0)),
            scratch_shapes=[
                pltpu.VMEM((num_parts, SUBLANES, LANES), jnp.float32),
            ],
        ),
        compiler_params=pltpu.CompilerParams(
            dimension_semantics=("parallel", "arbitrary"),
            vmem_limit_bytes=32 * 1024 * 1024,
        ),
    )(rx2, rxh2)

    total = jnp.sum(partials) + tail_sum
    return (total * (1.0 / n)).reshape(1)


if __name__ == "__main__":
    key = jax.random.PRNGKey(0)
    k1, k2, k3, k4 = jax.random.split(key, 4)

    def ref_loss(a, b):
        return jnp.mean(jax.nn.relu(1.0 + b) + jax.nn.relu(1.0 - a)).reshape(1)

    # Case 1: typical discriminator-score shape, 128-aligned element count.
    r_x = jax.random.normal(k1, (2, 4, 16, 16), dtype=jnp.float32)
    r_x_hat = jax.random.normal(k2, (2, 4, 16, 16), dtype=jnp.float32)
    out = loss_d(r_x, r_x_hat)
    jax.block_until_ready(out)
    assert out.shape == (1,)
    assert jnp.allclose(out, ref_loss(r_x, r_x_hat), atol=1e-5, rtol=1e-5), (
        out, ref_loss(r_x, r_x_hat))

    # Case 2: ragged element count (partial last block + XLA tail reduction).
    r_x2 = jax.random.normal(k3, (2, 3, 17, 19), dtype=jnp.float32)
    r_x_hat2 = jax.random.normal(k4, (2, 3, 17, 19), dtype=jnp.float32)
    out2 = loss_d(r_x2, r_x_hat2)
    jax.block_until_ready(out2)
    assert out2.shape == (1,)
    assert jnp.allclose(out2, ref_loss(r_x2, r_x_hat2), atol=1e-5, rtol=1e-5), (
        out2, ref_loss(r_x2, r_x_hat2))

    print("KERNEL_OK")
</pallas_src>

<mosaic_0001>
module attributes {stable_mosaic.version = 11 : i64} {
  func.func @_lossd_kernel(%arg0: i32, %arg1: i32, %arg2: memref<16x128xf32, #tpu.memory_space<vmem>>, %arg3: memref<16x128xf32, #tpu.memory_space<vmem>>, %arg4: memref<1x8x128xf32, #tpu.memory_space<vmem>>, %arg5: memref<1x8x128xf32, #tpu.memory_space<vmem>>) attributes {dimension_semantics = [#tpu.dimension_semantics<parallel>, #tpu.dimension_semantics<arbitrary>], iteration_bounds = array<i64: 1, 1>, scalar_prefetch = 0 : i64, scratch_operands = 1 : i64, tpu.core_type = #tpu.core_type<tc>, window_params = [{transform_indices = @transform_0, window_bounds = array<i64: 16, 128>}, {transform_indices = @transform_1, window_bounds = array<i64: 16, 128>}, {transform_indices = @transform_2, window_bounds = array<i64: 1, 8, 128>}]} {
    %c0_i32 = arith.constant 0 : i32
    %0 = arith.cmpi eq, %arg1, %c0_i32 : i32
    %1 = arith.extui %0 : i1 to i32
    %c0_i32_0 = arith.constant 0 : i32
    %2 = arith.cmpi ne, %1, %c0_i32_0 : i32
    scf.if %2 {
      %cst_13 = arith.constant 0.000000e+00 : f32
      %27 = vector.broadcast %cst_13 : f32 to vector<8x128xf32>
      %28 = arith.index_cast %arg0 : i32 to index
      %c0_14 = arith.constant 0 : index
      %c0_15 = arith.constant 0 : index
      %29 = vector.load %arg5[%28, %c0_14, %c0_15] : memref<1x8x128xf32, #tpu.memory_space<vmem>>, vector<1x8x128xf32>
      %30 = vector.shape_cast %29 : vector<1x8x128xf32> to vector<8x128xf32>
      %31 = vector.shape_cast %27 : vector<8x128xf32> to vector<1x8x128xf32>
      tpu.vector_store %arg5[%28, %c0_14, %c0_15], %31 {strides = array<i32>} : memref<1x8x128xf32, #tpu.memory_space<vmem>>, vector<1x8x128xf32>,
    } else {
    }
    %c0 = arith.constant 0 : index
    %c0_1 = arith.constant 0 : index
    %3 = vector.load %arg2[%c0, %c0_1] : memref<16x128xf32, #tpu.memory_space<vmem>>, vector<16x128xf32>
    %c0_2 = arith.constant 0 : index
    %c0_3 = arith.constant 0 : index
    %4 = vector.load %arg3[%c0_2, %c0_3] : memref<16x128xf32, #tpu.memory_space<vmem>>, vector<16x128xf32>
    %cst = arith.constant 1.000000e+00 : f32
    %5 = vector.broadcast %cst : f32 to vector<16x128xf32>
    %6 = arith.addf %5, %4 : vector<16x128xf32>
    %cst_4 = arith.constant 0.000000e+00 : f32
    %7 = vector.broadcast %cst_4 : f32 to vector<16x128xf32>
    %8 = arith.maximumf %6, %7 : vector<16x128xf32>
    %cst_5 = arith.constant 1.000000e+00 : f32
    %9 = vector.broadcast %cst_5 : f32 to vector<16x128xf32>
    %10 = arith.subf %9, %3 : vector<16x128xf32>
    %cst_6 = arith.constant 0.000000e+00 : f32
    %11 = vector.broadcast %cst_6 : f32 to vector<16x128xf32>
    %12 = arith.maximumf %10, %11 : vector<16x128xf32>
    %13 = arith.addf %8, %12 : vector<16x128xf32>
    %c1_i32 = arith.constant 1 : i32
    %14 = arith.muli %arg0, %c1_i32 : i32
    %15 = arith.addi %14, %arg1 : i32
    %c16_i32 = arith.constant 16 : i32
    %16 = arith.muli %15, %c16_i32 : i32
    %c16_i32_7 = arith.constant 16 : i32
    %17 = arith.addi %16, %c16_i32_7 : i32
    %c16_i32_8 = arith.constant 16 : i32
    %18 = arith.cmpi sle, %17, %c16_i32_8 : i32
    %19 = arith.extui %18 : i1 to i32
    %c0_i32_9 = arith.constant 0 : i32
    %20 = arith.cmpi ne, %19, %c0_i32_9 : i32
    scf.if %20 {
      %27 = arith.index_cast %arg0 : i32 to index
      %c0_13 = arith.constant 0 : index
      %c0_14 = arith.constant 0 : index
      %28 = vector.load %arg5[%27, %c0_13, %c0_14] : memref<1x8x128xf32, #tpu.memory_space<vmem>>, vector<1x8x128xf32>
      %29 = vector.shape_cast %28 : vector<1x8x128xf32> to vector<8x128xf32>
      %30 = vector.shape_cast %13 : vector<16x128xf32> to vector<2x8x128xf32>
      %cst_15 = arith.constant dense<0.000000e+00> : vector<8x128xf32>
      %31 = vector.multi_reduction <add>, %30, %cst_15 [0] : vector<2x8x128xf32> to vector<8x128xf32>
      %32 = arith.addf %29, %31 : vector<8x128xf32>
      %33 = arith.index_cast %arg0 : i32 to index
      %c0_16 = arith.constant 0 : index
      %c0_17 = arith.constant 0 : index
      %34 = vector.load %arg5[%33, %c0_16, %c0_17] : memref<1x8x128xf32, #tpu.memory_space<vmem>>, vector<1x8x128xf32>
      %35 = vector.shape_cast %34 : vector<1x8x128xf32> to vector<8x128xf32>
      %36 = vector.shape_cast %32 : vector<8x128xf32> to vector<1x8x128xf32>
      tpu.vector_store %arg5[%33, %c0_16, %c0_17], %36 {strides = array<i32>} : memref<1x8x128xf32, #tpu.memory_space<vmem>>, vector<1x8x128xf32>,
    } else {
    }
    %true = arith.constant true
    %21 = arith.xori %18, %true : i1
    %22 = arith.extui %21 : i1 to i32
    %c0_i32_10 = arith.constant 0 : i32
    %23 = arith.cmpi ne, %22, %c0_i32_10 : i32
    scf.if %23 {
      %27 = tpu.iota {dimensions = array<i32: 0>} : vector<16x128xi32>
      %28 = vector.broadcast %16 : i32 to vector<16x128xi32>
      %29 = arith.addi %28, %27 : vector<16x128xi32>
      %c16_i32_13 = arith.constant 16 : i32
      %30 = vector.broadcast %c16_i32_13 : i32 to vector<16x128xi32>
      %31 = arith.cmpi slt, %29, %30 : vector<16x128xi32>
      %cst_14 = arith.constant 0.000000e+00 : f32
      %32 = vector.broadcast %cst_14 : f32 to vector<16x128xf32>
      %33 = arith.select %31, %13, %32 : vector<16x128xi1>, vector<16x128xf32>
      %34 = arith.index_cast %arg0 : i32 to index
      %c0_15 = arith.constant 0 : index
      %c0_16 = arith.constant 0 : index
      %35 = vector.load %arg5[%34, %c0_15, %c0_16] : memref<1x8x128xf32, #tpu.memory_space<vmem>>, vector<1x8x128xf32>
      %36 = vector.shape_cast %35 : vector<1x8x128xf32> to vector<8x128xf32>
      %37 = vector.shape_cast %33 : vector<16x128xf32> to vector<2x8x128xf32>
      %cst_17 = arith.constant dense<0.000000e+00> : vector<8x128xf32>
      %38 = vector.multi_reduction <add>, %37, %cst_17 [0] : vector<2x8x128xf32> to vector<8x128xf32>
      %39 = arith.addf %36, %38 : vector<8x128xf32>
      %40 = arith.index_cast %arg0 : i32 to index
      %c0_18 = arith.constant 0 : index
      %c0_19 = arith.constant 0 : index
      %41 = vector.load %arg5[%40, %c0_18, %c0_19] : memref<1x8x128xf32, #tpu.memory_space<vmem>>, vector<1x8x128xf32>
      %42 = vector.shape_cast %41 : vector<1x8x128xf32> to vector<8x128xf32>
      %43 = vector.shape_cast %39 : vector<8x128xf32> to vector<1x8x128xf32>
      tpu.vector_store %arg5[%40, %c0_18, %c0_19], %43 {strides = array<i32>} : memref<1x8x128xf32, #tpu.memory_space<vmem>>, vector<1x8x128xf32>,
    } else {
    }
    %c0_i32_11 = arith.constant 0 : i32
    %24 = arith.cmpi eq, %arg1, %c0_i32_11 : i32
    %25 = arith.extui %24 : i1 to i32
    %c0_i32_12 = arith.constant 0 : i32
    %26 = arith.cmpi ne, %25, %c0_i32_12 : i32
    scf.if %26 {
      %27 = arith.index_cast %arg0 : i32 to index
      %c0_13 = arith.constant 0 : index
      %c0_14 = arith.constant 0 : index
      %28 = vector.load %arg5[%27, %c0_13, %c0_14] : memref<1x8x128xf32, #tpu.memory_space<vmem>>, vector<1x8x128xf32>
      %29 = vector.shape_cast %28 : vector<1x8x128xf32> to vector<8x128xf32>
      %c0_15 = arith.constant 0 : index
      %c0_16 = arith.constant 0 : index
      %c0_17 = arith.constant 0 : index
      %30 = vector.load %arg4[%c0_15, %c0_16, %c0_17] : memref<1x8x128xf32, #tpu.memory_space<vmem>>, vector<1x8x128xf32>
      %31 = vector.shape_cast %30 : vector<1x8x128xf32> to vector<8x128xf32>
      %32 = vector.shape_cast %29 : vector<8x128xf32> to vector<1x8x128xf32>
      tpu.vector_store %arg4[%c0_15, %c0_16, %c0_17], %32 {strides = array<i32>} : memref<1x8x128xf32, #tpu.memory_space<vmem>>, vector<1x8x128xf32>,
    } else {
    }
    return
  }
  func.func @transform_0(%arg0: i32, %arg1: i32) -> (i32, i32) {
    %c1_i32 = arith.constant 1 : i32
    %0 = arith.muli %arg0, %c1_i32 : i32
    %1 = arith.addi %0, %arg1 : i32
    %c0_i32 = arith.constant 0 : i32
    %2 = arith.minsi %1, %c0_i32 : i32
    %c0_i32_0 = arith.constant 0 : i32
    %c0_i32_1 = arith.constant 0 : i32
    return %2, %c0_i32_0 : i32, i32
  }
  func.func @transform_1(%arg0: i32, %arg1: i32) -> (i32, i32) {
    %c1_i32 = arith.constant 1 : i32
    %0 = arith.muli %arg0, %c1_i32 : i32
    %1 = arith.addi %0, %arg1 : i32
    %c0_i32 = arith.constant 0 : i32
    %2 = arith.minsi %1, %c0_i32 : i32
    %c0_i32_0 = arith.constant 0 : i32
    %c0_i32_1 = arith.constant 0 : i32
    return %2, %c0_i32_0 : i32, i32
  }
  func.func @transform_2(%arg0: i32, %arg1: i32) -> (i32, i32, i32) {
    %c0_i32 = arith.constant 0 : i32
    %c0_i32_0 = arith.constant 0 : i32
    %c0_i32_1 = arith.constant 0 : i32
    return %arg0, %c0_i32, %c0_i32_0 : i32, i32, i32
  }
}

</mosaic_0001>

<bundles_post_ra>
// kernel: tpu_custom_call.1
= control target key start
LH: loop header
LB: loop body
LE: loop exit
PB: predicated region body
PF: predicated region fallthrough
CT: control target
= control target key end

     0   :  { %7 = vsyncpa [#allocation4], 0  ;;  %s259_s0 = inlined_call_operand.hbm [shape: f32[16,128], index: 0, kind: input, shape index: {}]   ;;  %s260_s1 = inlined_call_operand.hbm [shape: f32[16,128], index: 1, kind: input, shape index: {}]   ;;  %s261_s2 = inlined_call_operand.hbm [shape: f32[1,8,128], index: 2, kind: output, shape index: {}]  }
   0x1   :  { %8 = vsyncpa [#allocation7], 0 }
   0x2   :  { %9 = vsyncpa [#allocation5], 0  ;;  %s20_s11 = sshll.u32 %s259_s0, 4  ;;  %s230_s12 = smov [#allocation3]   ;;  %s21_s11 = int_to_ptr.hbm [resolvable:$true] %s20_s11 }
   0x3   :  { %s22_s13 = sshll.u32 %s230_s12, 4  ;;  %s39_s16 = sshll.u32 %s260_s1, 4  ;;  %s23_s13 = int_to_ptr.vmem [resolvable:$true] %s22_s13  ;;  %s40_s16 = int_to_ptr.hbm [resolvable:$true] %s39_s16 }
   0x4   :  { %s231_s17 = smov 128   ;;  %s232_s18 = smov 8  }
   0x5   :  { %28 = dma.hbm_to_vmem [thread:$0]  %s21_s11, 256, %s23_s13, [#allocation4], %s231_s17, %s231_s17, %s232_s18  }
   0x6   :  { %s233_s19 = smov [#allocation6]  }
   0x7   :  { %s41_s20 = sshll.u32 %s233_s19, 4  ;;  %s42_s20 = int_to_ptr.vmem [resolvable:$true] %s41_s20 }
   0x8   :  { %47 = dma.hbm_to_vmem [thread:$0]  %s40_s16, 256, %s42_s20, [#allocation7], %s231_s17, %s231_s17, %s232_s18  }
   0x9   :  { %224 = dma.done.wait [#allocation4], 256  }
   0xa   :  { %225 = vsyncadd [#allocation4], 4294967040 }
   0xb   :  { %226 = dma.done.wait [#allocation7], 256  }
   0xc   :  { %227 = vsyncadd [#allocation7], 4294967040  ;;  %v71_v0 = vld [vmem:[#allocation3] sm:$0xff]  ;;  %v72_v1 = vld [vmem:[#allocation3 + $0x8] sm:$0xff]  ;;  %s234_s0 = smov [#allocation8]   ;;  %s132_s23 = sshll.u32 %s261_s2, 4  ;;  %s133_s23 = int_to_ptr.hbm [resolvable:$true] %s132_s23 }
   0xd   :  { %v73_v2 = vld [vmem:[#allocation6] sm:$0xff]  ;;  %v74_v3 = vld [vmem:[#allocation6 + $0x8] sm:$0xff]  ;;  %v79_v5 = vsub.f32 1.0, %v71_v0  ;;  %v80_v6 = vsub.f32 1.0, %v72_v1  ;;  %s130_s1 = sshll.u32 %s234_s0, 4  ;;  %s131_s1 = int_to_ptr.vmem [resolvable:$true] %s130_s1 }
   0xe   :  { %v75_v4 = vadd.f32 1.0, %v73_v2  ;;  %v76_v7 = vadd.f32 1.0, %v74_v3 }
   0xf   :  { %v81_v9 = vmax.f32 %v79_v5, 0.0  ;;  %v82_v10 = vmax.f32 %v80_v6, 0.0 }
  0x10   :  { %v77_v8 = vmax.f32 %v75_v4, 0.0  ;;  %v78_v11 = vmax.f32 %v76_v7, 0.0 }
  0x12   :  { %v83_v12 = vadd.f32 %v81_v9, %v77_v8  ;;  %v84_v13 = vadd.f32 %v82_v10, %v78_v11 }
  0x14   :  { %v95_v14 = vadd.f32 %v84_v13, %v83_v12 }
  0x16   :  { %124 = vst [vmem:[#allocation8] sm:$0xff] %v95_v14 }
  0x17   :  { %135 = dma.vmem_to_hbm [thread:$0]  %s131_s1, 128, %s133_s23, [#allocation5]  }
  0x18   :  { %228 = dma.done.wait [#allocation5], 128  }
  0x19   :  { %229 = vsyncadd [#allocation5], 4294967168 }
  0x1a   :  { %140 = vsyncpa [#allocation4], 1 }
  0x1b   :  { %141 = vsyncpa [#allocation7], 1 }
  0x1c   :  { %142 = vsyncpa [#allocation5], 1 }

</bundles_post_ra>
